<compile_context>
chip_gen: v7x
topology: tpu7x:2x2x1
jax: 0.10.0
libtpu: 0.0.40
codegen_flags: <defaults>
</compile_context>

<pallas_src>
import functools
import math

import jax
import jax.numpy as jnp
from jax import lax
from jax.experimental import pallas as pl
from jax.experimental.pallas import tpu as pltpu


# -----------------------------------------------------------------------------
# Fused kernel: QKV proj + per-head attention + out proj + residual + LayerNorm
# -----------------------------------------------------------------------------
def _cross_attn_layer_kernel(*refs, num_heads, scale, has_qpos, has_pos, has_mask,
                             normalize_before, eps):
    it = iter(refs)
    tgt_ref = next(it)                              # (1, Lq, D)  f32
    qpos_ref = next(it) if has_qpos else None       # (1, Lq, D)  f32
    mem_ref = next(it)                              # (1, Lk, D)  f32
    pos_ref = next(it) if has_pos else None         # (1, Lk, D)  f32
    mask_ref = next(it) if has_mask else None       # (1, Lq, Lk) bool (True = masked)
    in_w_ref = next(it)                             # (3D, D)     bf16
    in_b_ref = next(it)                             # (1, 3D)     f32
    out_w_ref = next(it)                            # (D, D)      bf16
    out_b_ref = next(it)                            # (1, D)      f32
    g_ref = next(it)                                # (1, D)      f32
    b_ref = next(it)                                # (1, D)      f32
    o_ref = next(it)                                # (1, Lq, D)  f32

    f32 = jnp.float32
    bf16 = jnp.bfloat16
    d = tgt_ref.shape[-1]
    dh = d // num_heads

    def layer_norm(x):                              # f32 math
        mu = jnp.mean(x, axis=-1, keepdims=True)
        xc = x - mu
        var = jnp.mean(xc * xc, axis=-1, keepdims=True)
        return xc * lax.rsqrt(var + eps) * g_ref[...] + b_ref[...]

    tgt = tgt_ref[0].astype(f32)                    # (Lq, D)
    q_src = layer_norm(tgt) if normalize_before else tgt
    q_in = q_src + qpos_ref[0].astype(f32) if has_qpos else q_src
    mem = mem_ref[0].astype(f32)                    # (Lk, D)
    k_in = mem + pos_ref[0].astype(f32) if has_pos else mem

    in_w = in_w_ref[...]                            # (3D, D) bf16
    in_b = in_b_ref[...]                            # (1, 3D) f32

    def proj(x, w, b2):
        # x: (L, D) f32, w: (Dout, D) bf16, b2: (1, Dout) f32  ->  x @ w.T + b  in f32
        y = lax.dot_general(x.astype(bf16), w, (((1,), (1,)), ((), ())),
                            preferred_element_type=f32)
        return y + b2

    q = proj(q_in, in_w[0 * d:1 * d], in_b[:, 0 * d:1 * d])     # (Lq, D)
    k = proj(k_in, in_w[1 * d:2 * d], in_b[:, 1 * d:2 * d])     # (Lk, D)
    v = proj(mem,  in_w[2 * d:3 * d], in_b[:, 2 * d:3 * d])     # (Lk, D)

    if has_mask:
        # Large-but-finite negative (not -inf): a fully masked row gives uniform attention
        # instead of NaN (matches the Mask2Former in-place workaround semantics).
        add_mask = jnp.where(mask_ref[0], f32(-1e30), f32(0.0))  # (Lq, Lk)

    heads = []
    for h in range(num_heads):                      # static unroll over heads
        sl = slice(h * dh, (h + 1) * dh)
        qh = q[:, sl].astype(bf16)                  # (Lq, Dh)
        kh = k[:, sl].astype(bf16)                  # (Lk, Dh)
        vh = v[:, sl].astype(bf16)                  # (Lk, Dh)
        s = lax.dot_general(qh, kh, (((1,), (1,)), ((), ())),
                            preferred_element_type=f32) * scale  # (Lq, Lk) f32
        if has_mask:
            s = s + add_mask
        s = s - jnp.max(s, axis=-1, keepdims=True)
        p = jnp.exp(s)
        p = p * pl.reciprocal(jnp.sum(p, axis=-1, keepdims=True), approx=True)
        heads.append(jnp.dot(p.astype(bf16), vh, preferred_element_type=f32))  # (Lq, Dh)

    attn = jnp.concatenate(heads, axis=-1)          # (Lq, D) f32
    o = lax.dot_general(attn.astype(bf16), out_w_ref[...], (((1,), (1,)), ((), ())),
                        preferred_element_type=f32) + out_b_ref[...]
    y = tgt + o                                     # residual (dropout = 0 -> identity)
    if not normalize_before:
        y = layer_norm(y)
    o_ref[0] = y


# -----------------------------------------------------------------------------
# Mask bookkeeping shared by the Pallas wrapper and the pure-JAX reference
# -----------------------------------------------------------------------------
def _combine_masks(memory_mask, memory_key_padding_mask, b, lq, lk, num_heads):
    """Collapse attn_mask / key_padding_mask into one (B, Lq, Lk) bool mask (True = masked)."""
    mask_b = None
    if memory_mask is not None:
        m = memory_mask.astype(jnp.bool_)
        if m.ndim == 2:                                   # (Lq, Lk), shared across batch
            m = jnp.broadcast_to(m[None], (b, lq, lk))
        elif m.shape[0] == b:                             # already per-batch
            pass
        else:                                             # (B*H, Lq, Lk): Mask2Former layout,
            m = m.reshape(b, num_heads, lq, lk)[:, 0]     # identical across heads -> per batch
        mask_b = m
    if memory_key_padding_mask is not None:
        kpm = memory_key_padding_mask.astype(jnp.bool_)[:, None, :]
        kpm = jnp.broadcast_to(kpm, (b, lq, lk))
        mask_b = kpm if mask_b is None else jnp.logical_or(mask_b, kpm)
    return mask_b


# -----------------------------------------------------------------------------
# Wrapper (PyTorch CrossAttentionLayer.forward semantics, seq-first tensors)
# -----------------------------------------------------------------------------
def cross_attention_layer(params, tgt, memory, memory_mask=None,
                          memory_key_padding_mask=None, pos=None, query_pos=None,
                          *, num_heads, normalize_before=False, eps=1e-5):
    """tgt: (Lq, B, D), memory/pos: (Lk, B, D), query_pos: (Lq, B, D) -> (Lq, B, D)."""
    lq, b, d = tgt.shape
    lk = memory.shape[0]
    assert d % num_heads == 0
    dh = d // num_heads
    f32, bf16 = jnp.float32, jnp.bfloat16

    # seq-first (L, B, D) -> batch-first (B, L, D): one contiguous lane-dense tile per grid step.
    tgt_b = jnp.transpose(tgt, (1, 0, 2)).astype(f32)
    mem_b = jnp.transpose(memory, (1, 0, 2)).astype(f32)
    qpos_b = None if query_pos is None else jnp.transpose(query_pos, (1, 0, 2)).astype(f32)
    pos_b = None if pos is None else jnp.transpose(pos, (1, 0, 2)).astype(f32)
    mask_b = _combine_masks(memory_mask, memory_key_padding_mask, b, lq, lk, num_heads)

    in_w = params["in_proj_weight"].astype(bf16)                     # (3D, D)
    in_b = params["in_proj_bias"].reshape(1, 3 * d).astype(f32)
    out_w = params["out_proj_weight"].astype(bf16)                   # (D, D)
    out_b = params["out_proj_bias"].reshape(1, d).astype(f32)
    gamma = params["norm_weight"].reshape(1, d).astype(f32)
    beta = params["norm_bias"].reshape(1, d).astype(f32)

    per_batch = lambda i: (i, 0, 0)
    shared = lambda i: (0, 0)

    inputs = [tgt_b]
    in_specs = [pl.BlockSpec((1, lq, d), per_batch)]
    if qpos_b is not None:
        inputs.append(qpos_b)
        in_specs.append(pl.BlockSpec((1, lq, d), per_batch))
    inputs.append(mem_b)
    in_specs.append(pl.BlockSpec((1, lk, d), per_batch))
    if pos_b is not None:
        inputs.append(pos_b)
        in_specs.append(pl.BlockSpec((1, lk, d), per_batch))
    if mask_b is not None:
        inputs.append(mask_b)
        in_specs.append(pl.BlockSpec((1, lq, lk), per_batch))
    inputs += [in_w, in_b, out_w, out_b, gamma, beta]
    in_specs += [
        pl.BlockSpec((3 * d, d), shared),
        pl.BlockSpec((1, 3 * d), shared),
        pl.BlockSpec((d, d), shared),
        pl.BlockSpec((1, d), shared),
        pl.BlockSpec((1, d), shared),
        pl.BlockSpec((1, d), shared),
    ]

    kernel = functools.partial(
        _cross_attn_layer_kernel,
        num_heads=num_heads, scale=1.0 / math.sqrt(dh),
        has_qpos=qpos_b is not None, has_pos=pos_b is not None,
        has_mask=mask_b is not None, normalize_before=normalize_before, eps=eps)

    out = pl.pallas_call(
        kernel,
        out_shape=jax.ShapeDtypeStruct((b, lq, d), f32),
        grid=(b,),
        in_specs=in_specs,
        out_specs=pl.BlockSpec((1, lq, d), per_batch),
        compiler_params=pltpu.CompilerParams(dimension_semantics=("parallel",)),
    )(*inputs)
    return jnp.transpose(out, (1, 0, 2))            # back to (Lq, B, D)


# -----------------------------------------------------------------------------
# Pure-JAX reference (f32) for a loose correctness check
# -----------------------------------------------------------------------------
def cross_attention_layer_ref(params, tgt, memory, memory_mask=None,
                              memory_key_padding_mask=None, pos=None, query_pos=None,
                              *, num_heads, normalize_before=False, eps=1e-5):
    lq, b, d = tgt.shape
    lk = memory.shape[0]
    dh = d // num_heads
    f32 = jnp.float32

    def ln(x):
        mu = jnp.mean(x, axis=-1, keepdims=True)
        xc = x - mu
        var = jnp.mean(xc * xc, axis=-1, keepdims=True)
        return xc / jnp.sqrt(var + eps) * params["norm_weight"] + params["norm_bias"]

    x = tgt.astype(f32)
    q_src = ln(x) if normalize_before else x
    q_in = q_src if query_pos is None else q_src + query_pos
    k_in = memory.astype(f32) if pos is None else memory.astype(f32) + pos
    v_in = memory.astype(f32)

    W = params["in_proj_weight"].astype(f32)
    B_ = params["in_proj_bias"].astype(f32)
    q = q_in @ W[:d].T + B_[:d]
    k = k_in @ W[d:2 * d].T + B_[d:2 * d]
    v = v_in @ W[2 * d:].T + B_[2 * d:]

    def split(t, L):
        return t.reshape(L, b, num_heads, dh).transpose(1, 2, 0, 3)   # (B, H, L, Dh)

    qh, kh, vh = split(q, lq), split(k, lk), split(v, lk)
    s = jnp.einsum('bhqd,bhkd->bhqk', qh, kh) / math.sqrt(dh)
    mask_b = _combine_masks(memory_mask, memory_key_padding_mask, b, lq, lk, num_heads)
    if mask_b is not None:
        s = s + jnp.where(mask_b[:, None], jnp.float32(-1e30), jnp.float32(0.0))
    p = jax.nn.softmax(s, axis=-1)
    o = jnp.einsum('bhqk,bhkd->bhqd', p, vh)
    o = o.transpose(2, 0, 1, 3).reshape(lq, b, d)
    o = o @ params["out_proj_weight"].astype(f32).T + params["out_proj_bias"].astype(f32)
    y = x + o
    return y if normalize_before else ln(y)


# -----------------------------------------------------------------------------
if __name__ == "__main__":
    key = jax.random.PRNGKey(0)
    B, D, H = 2, 32, 4
    Lq, Lk = 8, 64                     # 8 queries attending to an 8x8 feature map
    ks = jax.random.split(key, 10)

    def xavier(k, shape):
        a = math.sqrt(6.0 / (shape[0] + shape[1]))
        return jax.random.uniform(k, shape, jnp.float32, -a, a)

    params = {
        "in_proj_weight": xavier(ks[0], (3 * D, D)),
        "in_proj_bias": 0.02 * jax.random.normal(ks[1], (3 * D,), jnp.float32),
        "out_proj_weight": xavier(ks[2], (D, D)),
        "out_proj_bias": 0.02 * jax.random.normal(ks[3], (D,), jnp.float32),
        "norm_weight": jnp.ones((D,), jnp.float32),
        "norm_bias": jnp.zeros((D,), jnp.float32),
    }
    tgt = jax.random.normal(ks[4], (Lq, B, D), jnp.float32)
    memory = jax.random.normal(ks[5], (Lk, B, D), jnp.float32)
    pos = jax.random.normal(ks[6], (Lk, B, D), jnp.float32)
    query_pos = jax.random.normal(ks[7], (Lq, B, D), jnp.float32)
    # Mask2Former-style (B*nheads, Lq, Lk) bool mask (identical across heads); True = masked.
    base_mask = jax.random.bernoulli(ks[8], 0.3, (B, Lq, Lk))
    memory_mask = jnp.broadcast_to(base_mask[:, None], (B, H, Lq, Lk)).reshape(B * H, Lq, Lk)

    out = cross_attention_layer(params, tgt, memory, memory_mask=memory_mask,
                                pos=pos, query_pos=query_pos, num_heads=H)
    out = jax.block_until_ready(out)

    ref = cross_attention_layer_ref(params, tgt, memory, memory_mask=memory_mask,
                                    pos=pos, query_pos=query_pos, num_heads=H)

    assert out.shape == (Lq, B, D)
    assert bool(jnp.all(jnp.isfinite(out)))
    # bf16 MXU operands + approximate reciprocal -> loose tolerance vs the f32 reference.
    max_err = float(jnp.max(jnp.abs(out - ref)))
    assert max_err < 0.25, f"max abs err {max_err}"
    print("KERNEL_OK")
</pallas_src>

<mosaic_0001>
module attributes {stable_mosaic.version = 11 : i64} {
  func.func @_cross_attn_layer_kernel(%arg0: i32, %arg1: memref<1x8x32xf32, #tpu.memory_space<vmem>>, %arg2: memref<1x8x32xf32, #tpu.memory_space<vmem>>, %arg3: memref<1x64x32xf32, #tpu.memory_space<vmem>>, %arg4: memref<1x64x32xf32, #tpu.memory_space<vmem>>, %arg5: memref<1x8x64xi32, #tpu.memory_space<vmem>>, %arg6: memref<96x32xbf16, #tpu.memory_space<vmem>>, %arg7: memref<1x96xf32, #tpu.memory_space<vmem>>, %arg8: memref<32x32xbf16, #tpu.memory_space<vmem>>, %arg9: memref<1x32xf32, #tpu.memory_space<vmem>>, %arg10: memref<1x32xf32, #tpu.memory_space<vmem>>, %arg11: memref<1x32xf32, #tpu.memory_space<vmem>>, %arg12: memref<1x8x32xf32, #tpu.memory_space<vmem>>) attributes {dimension_semantics = [#tpu.dimension_semantics<parallel>], iteration_bounds = array<i64: 2>, scalar_prefetch = 0 : i64, scratch_operands = 0 : i64, tpu.core_type = #tpu.core_type<tc>, window_params = [{transform_indices = @transform_0, window_bounds = array<i64: 1, 8, 32>}, {transform_indices = @transform_1, window_bounds = array<i64: 1, 8, 32>}, {transform_indices = @transform_2, window_bounds = array<i64: 1, 64, 32>}, {transform_indices = @transform_3, window_bounds = array<i64: 1, 64, 32>}, {transform_indices = @transform_4, window_bounds = array<i64: 1, 8, 64>}, {pipeline_mode = #tpu.pipeline_mode<synchronous>, transform_indices = @transform_5, window_bounds = array<i64: 96, 32>}, {pipeline_mode = #tpu.pipeline_mode<synchronous>, transform_indices = @transform_6, window_bounds = array<i64: 1, 96>}, {pipeline_mode = #tpu.pipeline_mode<synchronous>, transform_indices = @transform_7, window_bounds = array<i64: 32, 32>}, {pipeline_mode = #tpu.pipeline_mode<synchronous>, transform_indices = @transform_8, window_bounds = array<i64: 1, 32>}, {pipeline_mode = #tpu.pipeline_mode<synchronous>, transform_indices = @transform_9, window_bounds = array<i64: 1, 32>}, {pipeline_mode = #tpu.pipeline_mode<synchronous>, transform_indices = @transform_10, window_bounds = array<i64: 1, 32>}, {transform_indices = @transform_11, window_bounds = array<i64: 1, 8, 32>}]} {
    %c0 = arith.constant 0 : index
    %c0_0 = arith.constant 0 : index
    %c0_1 = arith.constant 0 : index
    %0 = vector.load %arg1[%c0, %c0_0, %c0_1] : memref<1x8x32xf32, #tpu.memory_space<vmem>>, vector<1x8x32xf32>
    %1 = vector.shape_cast %0 : vector<1x8x32xf32> to vector<8x32xf32>
    %c0_2 = arith.constant 0 : index
    %c0_3 = arith.constant 0 : index
    %c0_4 = arith.constant 0 : index
    %2 = vector.load %arg2[%c0_2, %c0_3, %c0_4] : memref<1x8x32xf32, #tpu.memory_space<vmem>>, vector<1x8x32xf32>
    %3 = vector.shape_cast %2 : vector<1x8x32xf32> to vector<8x32xf32>
    %4 = arith.addf %1, %3 : vector<8x32xf32>
    %c0_5 = arith.constant 0 : index
    %c0_6 = arith.constant 0 : index
    %c0_7 = arith.constant 0 : index
    %5 = vector.load %arg3[%c0_5, %c0_6, %c0_7] : memref<1x64x32xf32, #tpu.memory_space<vmem>>, vector<1x64x32xf32>
    %6 = vector.shape_cast %5 : vector<1x64x32xf32> to vector<64x32xf32>
    %c0_8 = arith.constant 0 : index
    %c0_9 = arith.constant 0 : index
    %c0_10 = arith.constant 0 : index
    %7 = vector.load %arg4[%c0_8, %c0_9, %c0_10] : memref<1x64x32xf32, #tpu.memory_space<vmem>>, vector<1x64x32xf32>
    %8 = vector.shape_cast %7 : vector<1x64x32xf32> to vector<64x32xf32>
    %9 = arith.addf %6, %8 : vector<64x32xf32>
    %c0_11 = arith.constant 0 : index
    %c0_12 = arith.constant 0 : index
    %10 = vector.load %arg6[%c0_11, %c0_12] : memref<96x32xbf16, #tpu.memory_space<vmem>>, vector<96x32xbf16>
    %c0_13 = arith.constant 0 : index
    %c0_14 = arith.constant 0 : index
    %11 = vector.load %arg7[%c0_13, %c0_14] : memref<1x96xf32, #tpu.memory_space<vmem>>, vector<1x96xf32>
    %12 = vector.extract_strided_slice %10 {offsets = [0, 0], sizes = [32, 32], strides = [1, 1]} : vector<96x32xbf16> to vector<32x32xbf16>
    %13 = vector.extract_strided_slice %11 {offsets = [0, 0], sizes = [1, 32], strides = [1, 1]} : vector<1x96xf32> to vector<1x32xf32>
    %14 = arith.truncf %4 : vector<8x32xf32> to vector<8x32xbf16>
    %cst = arith.constant dense<0.000000e+00> : vector<8x32xf32>
    %15 = tpu.matmul %14, %12, %cst {dimension_numbers = #tpu.dot_dimension_numbers<[1], [1], [0], [0], [0, 0, 1, 0], [], []>} : vector<8x32xbf16>, vector<32x32xbf16>, vector<8x32xf32> -> vector<8x32xf32>
    %16 = vector.broadcast %13 : vector<1x32xf32> to vector<8x32xf32>
    %17 = arith.addf %15, %16 : vector<8x32xf32>
    %18 = vector.extract_strided_slice %10 {offsets = [32, 0], sizes = [32, 32], strides = [1, 1]} : vector<96x32xbf16> to vector<32x32xbf16>
    %19 = vector.extract_strided_slice %11 {offsets = [0, 32], sizes = [1, 32], strides = [1, 1]} : vector<1x96xf32> to vector<1x32xf32>
    %20 = arith.truncf %9 : vector<64x32xf32> to vector<64x32xbf16>
    %cst_15 = arith.constant dense<0.000000e+00> : vector<64x32xf32>
    %21 = tpu.matmul %20, %18, %cst_15 {dimension_numbers = #tpu.dot_dimension_numbers<[1], [1], [0], [0], [0, 0, 1, 0], [], []>} : vector<64x32xbf16>, vector<32x32xbf16>, vector<64x32xf32> -> vector<64x32xf32>
    %22 = vector.broadcast %19 : vector<1x32xf32> to vector<64x32xf32>
    %23 = arith.addf %21, %22 : vector<64x32xf32>
    %24 = vector.extract_strided_slice %10 {offsets = [64, 0], sizes = [32, 32], strides = [1, 1]} : vector<96x32xbf16> to vector<32x32xbf16>
    %25 = vector.extract_strided_slice %11 {offsets = [0, 64], sizes = [1, 32], strides = [1, 1]} : vector<1x96xf32> to vector<1x32xf32>
    %26 = arith.truncf %6 : vector<64x32xf32> to vector<64x32xbf16>
    %cst_16 = arith.constant dense<0.000000e+00> : vector<64x32xf32>
    %27 = tpu.matmul %26, %24, %cst_16 {dimension_numbers = #tpu.dot_dimension_numbers<[1], [1], [0], [0], [0, 0, 1, 0], [], []>} : vector<64x32xbf16>, vector<32x32xbf16>, vector<64x32xf32> -> vector<64x32xf32>
    %28 = vector.broadcast %25 : vector<1x32xf32> to vector<64x32xf32>
    %29 = arith.addf %27, %28 : vector<64x32xf32>
    %c0_17 = arith.constant 0 : index
    %c0_18 = arith.constant 0 : index
    %c0_19 = arith.constant 0 : index
    %30 = vector.load %arg5[%c0_17, %c0_18, %c0_19] : memref<1x8x64xi32, #tpu.memory_space<vmem>>, vector<1x8x64xi32>
    %31 = vector.shape_cast %30 : vector<1x8x64xi32> to vector<8x64xi32>
    %cst_20 = arith.constant dense<0> : vector<8x64xi32>
    %32 = arith.cmpi ne, %31, %cst_20 : vector<8x64xi32>
    %cst_21 = arith.constant -1.000000e+30 : f32
    %cst_22 = arith.constant 0.000000e+00 : f32
    %33 = vector.broadcast %cst_21 : f32 to vector<8x64xf32>
    %34 = vector.broadcast %cst_22 : f32 to vector<8x64xf32>
    %35 = arith.select %32, %33, %34 : vector<8x64xi1>, vector<8x64xf32>
    %36 = vector.extract_strided_slice %17 {offsets = [0, 0], sizes = [8, 8], strides = [1, 1]} : vector<8x32xf32> to vector<8x8xf32>
    %37 = arith.truncf %36 : vector<8x8xf32> to vector<8x8xbf16>
    %38 = vector.extract_strided_slice %23 {offsets = [0, 0], sizes = [64, 8], strides = [1, 1]} : vector<64x32xf32> to vector<64x8xf32>
    %39 = arith.truncf %38 : vector<64x8xf32> to vector<64x8xbf16>
    %40 = vector.extract_strided_slice %29 {offsets = [0, 0], sizes = [64, 8], strides = [1, 1]} : vector<64x32xf32> to vector<64x8xf32>
    %41 = arith.truncf %40 : vector<64x8xf32> to vector<64x8xbf16>
    %cst_23 = arith.constant dense<0.000000e+00> : vector<8x64xf32>
    %42 = tpu.matmul %37, %39, %cst_23 {dimension_numbers = #tpu.dot_dimension_numbers<[1], [1], [0], [0], [0, 0, 1, 0], [], []>} : vector<8x8xbf16>, vector<64x8xbf16>, vector<8x64xf32> -> vector<8x64xf32>
    %cst_24 = arith.constant 0.353553385 : f32
    %43 = vector.broadcast %cst_24 : f32 to vector<8x64xf32>
    %44 = arith.mulf %42, %43 : vector<8x64xf32>
    %45 = arith.addf %44, %35 : vector<8x64xf32>
    %cst_25 = arith.constant dense<0xFF800000> : vector<8xf32>
    %46 = vector.multi_reduction <maximumf>, %45, %cst_25 [1] : vector<8x64xf32> to vector<8xf32>
    %47 = vector.shape_cast %46 : vector<8xf32> to vector<8x1xf32>
    %48 = vector.broadcast %47 : vector<8x1xf32> to vector<8x64xf32>
    %49 = arith.subf %45, %48 : vector<8x64xf32>
    %50 = math.exp %49 : vector<8x64xf32>
    %cst_26 = arith.constant dense<0.000000e+00> : vector<8xf32>
    %51 = vector.multi_reduction <add>, %50, %cst_26 [1] : vector<8x64xf32> to vector<8xf32>
    %52 = vector.shape_cast %51 : vector<8xf32> to vector<8x1xf32>
    %53 = tpu.reciprocal %52 {approx = true} : vector<8x1xf32> -> vector<8x1xf32>
    %54 = vector.broadcast %53 : vector<8x1xf32> to vector<8x64xf32>
    %55 = arith.mulf %50, %54 : vector<8x64xf32>
    %56 = arith.truncf %55 : vector<8x64xf32> to vector<8x64xbf16>
    %cst_27 = arith.constant dense<0.000000e+00> : vector<8x8xf32>
    %57 = tpu.matmul %56, %41, %cst_27 {dimension_numbers = #tpu.dot_dimension_numbers<[1], [0], [0], [1], [0, 0, 1, 1], [], []>} : vector<8x64xbf16>, vector<64x8xbf16>, vector<8x8xf32> -> vector<8x8xf32>
    %58 = vector.extract_strided_slice %17 {offsets = [0, 8], sizes = [8, 8], strides = [1, 1]} : vector<8x32xf32> to vector<8x8xf32>
    %59 = arith.truncf %58 : vector<8x8xf32> to vector<8x8xbf16>
    %60 = vector.extract_strided_slice %23 {offsets = [0, 8], sizes = [64, 8], strides = [1, 1]} : vector<64x32xf32> to vector<64x8xf32>
    %61 = arith.truncf %60 : vector<64x8xf32> to vector<64x8xbf16>
    %62 = vector.extract_strided_slice %29 {offsets = [0, 8], sizes = [64, 8], strides = [1, 1]} : vector<64x32xf32> to vector<64x8xf32>
    %63 = arith.truncf %62 : vector<64x8xf32> to vector<64x8xbf16>
    %cst_28 = arith.constant dense<0.000000e+00> : vector<8x64xf32>
    %64 = tpu.matmul %59, %61, %cst_28 {dimension_numbers = #tpu.dot_dimension_numbers<[1], [1], [0], [0], [0, 0, 1, 0], [], []>} : vector<8x8xbf16>, vector<64x8xbf16>, vector<8x64xf32> -> vector<8x64xf32>
    %cst_29 = arith.constant 0.353553385 : f32
    %65 = vector.broadcast %cst_29 : f32 to vector<8x64xf32>
    %66 = arith.mulf %64, %65 : vector<8x64xf32>
    %67 = arith.addf %66, %35 : vector<8x64xf32>
    %cst_30 = arith.constant dense<0xFF800000> : vector<8xf32>
    %68 = vector.multi_reduction <maximumf>, %67, %cst_30 [1] : vector<8x64xf32> to vector<8xf32>
    %69 = vector.shape_cast %68 : vector<8xf32> to vector<8x1xf32>
    %70 = vector.broadcast %69 : vector<8x1xf32> to vector<8x64xf32>
    %71 = arith.subf %67, %70 : vector<8x64xf32>
    %72 = math.exp %71 : vector<8x64xf32>
    %cst_31 = arith.constant dense<0.000000e+00> : vector<8xf32>
    %73 = vector.multi_reduction <add>, %72, %cst_31 [1] : vector<8x64xf32> to vector<8xf32>
    %74 = vector.shape_cast %73 : vector<8xf32> to vector<8x1xf32>
    %75 = tpu.reciprocal %74 {approx = true} : vector<8x1xf32> -> vector<8x1xf32>
    %76 = vector.broadcast %75 : vector<8x1xf32> to vector<8x64xf32>
    %77 = arith.mulf %72, %76 : vector<8x64xf32>
    %78 = arith.truncf %77 : vector<8x64xf32> to vector<8x64xbf16>
    %cst_32 = arith.constant dense<0.000000e+00> : vector<8x8xf32>
    %79 = tpu.matmul %78, %63, %cst_32 {dimension_numbers = #tpu.dot_dimension_numbers<[1], [0], [0], [1], [0, 0, 1, 1], [], []>} : vector<8x64xbf16>, vector<64x8xbf16>, vector<8x8xf32> -> vector<8x8xf32>
    %80 = vector.extract_strided_slice %17 {offsets = [0, 16], sizes = [8, 8], strides = [1, 1]} : vector<8x32xf32> to vector<8x8xf32>
    %81 = arith.truncf %80 : vector<8x8xf32> to vector<8x8xbf16>
    %82 = vector.extract_strided_slice %23 {offsets = [0, 16], sizes = [64, 8], strides = [1, 1]} : vector<64x32xf32> to vector<64x8xf32>
    %83 = arith.truncf %82 : vector<64x8xf32> to vector<64x8xbf16>
    %84 = vector.extract_strided_slice %29 {offsets = [0, 16], sizes = [64, 8], strides = [1, 1]} : vector<64x32xf32> to vector<64x8xf32>
    %85 = arith.truncf %84 : vector<64x8xf32> to vector<64x8xbf16>
    %cst_33 = arith.constant dense<0.000000e+00> : vector<8x64xf32>
    %86 = tpu.matmul %81, %83, %cst_33 {dimension_numbers = #tpu.dot_dimension_numbers<[1], [1], [0], [0], [0, 0, 1, 0], [], []>} : vector<8x8xbf16>, vector<64x8xbf16>, vector<8x64xf32> -> vector<8x64xf32>
    %cst_34 = arith.constant 0.353553385 : f32
    %87 = vector.broadcast %cst_34 : f32 to vector<8x64xf32>
    %88 = arith.mulf %86, %87 : vector<8x64xf32>
    %89 = arith.addf %88, %35 : vector<8x64xf32>
    %cst_35 = arith.constant dense<0xFF800000> : vector<8xf32>
    %90 = vector.multi_reduction <maximumf>, %89, %cst_35 [1] : vector<8x64xf32> to vector<8xf32>
    %91 = vector.shape_cast %90 : vector<8xf32> to vector<8x1xf32>
    %92 = vector.broadcast %91 : vector<8x1xf32> to vector<8x64xf32>
    %93 = arith.subf %89, %92 : vector<8x64xf32>
    %94 = math.exp %93 : vector<8x64xf32>
    %cst_36 = arith.constant dense<0.000000e+00> : vector<8xf32>
    %95 = vector.multi_reduction <add>, %94, %cst_36 [1] : vector<8x64xf32> to vector<8xf32>
    %96 = vector.shape_cast %95 : vector<8xf32> to vector<8x1xf32>
    %97 = tpu.reciprocal %96 {approx = true} : vector<8x1xf32> -> vector<8x1xf32>
    %98 = vector.broadcast %97 : vector<8x1xf32> to vector<8x64xf32>
    %99 = arith.mulf %94, %98 : vector<8x64xf32>
    %100 = arith.truncf %99 : vector<8x64xf32> to vector<8x64xbf16>
    %cst_37 = arith.constant dense<0.000000e+00> : vector<8x8xf32>
    %101 = tpu.matmul %100, %85, %cst_37 {dimension_numbers = #tpu.dot_dimension_numbers<[1], [0], [0], [1], [0, 0, 1, 1], [], []>} : vector<8x64xbf16>, vector<64x8xbf16>, vector<8x8xf32> -> vector<8x8xf32>
    %102 = vector.extract_strided_slice %17 {offsets = [0, 24], sizes = [8, 8], strides = [1, 1]} : vector<8x32xf32> to vector<8x8xf32>
    %103 = arith.truncf %102 : vector<8x8xf32> to vector<8x8xbf16>
    %104 = vector.extract_strided_slice %23 {offsets = [0, 24], sizes = [64, 8], strides = [1, 1]} : vector<64x32xf32> to vector<64x8xf32>
    %105 = arith.truncf %104 : vector<64x8xf32> to vector<64x8xbf16>
    %106 = vector.extract_strided_slice %29 {offsets = [0, 24], sizes = [64, 8], strides = [1, 1]} : vector<64x32xf32> to vector<64x8xf32>
    %107 = arith.truncf %106 : vector<64x8xf32> to vector<64x8xbf16>
    %cst_38 = arith.constant dense<0.000000e+00> : vector<8x64xf32>
    %108 = tpu.matmul %103, %105, %cst_38 {dimension_numbers = #tpu.dot_dimension_numbers<[1], [1], [0], [0], [0, 0, 1, 0], [], []>} : vector<8x8xbf16>, vector<64x8xbf16>, vector<8x64xf32> -> vector<8x64xf32>
    %cst_39 = arith.constant 0.353553385 : f32
    %109 = vector.broadcast %cst_39 : f32 to vector<8x64xf32>
    %110 = arith.mulf %108, %109 : vector<8x64xf32>
    %111 = arith.addf %110, %35 : vector<8x64xf32>
    %cst_40 = arith.constant dense<0xFF800000> : vector<8xf32>
    %112 = vector.multi_reduction <maximumf>, %111, %cst_40 [1] : vector<8x64xf32> to vector<8xf32>
    %113 = vector.shape_cast %112 : vector<8xf32> to vector<8x1xf32>
    %114 = vector.broadcast %113 : vector<8x1xf32> to vector<8x64xf32>
    %115 = arith.subf %111, %114 : vector<8x64xf32>
    %116 = math.exp %115 : vector<8x64xf32>
    %cst_41 = arith.constant dense<0.000000e+00> : vector<8xf32>
    %117 = vector.multi_reduction <add>, %116, %cst_41 [1] : vector<8x64xf32> to vector<8xf32>
    %118 = vector.shape_cast %117 : vector<8xf32> to vector<8x1xf32>
    %119 = tpu.reciprocal %118 {approx = true} : vector<8x1xf32> -> vector<8x1xf32>
    %120 = vector.broadcast %119 : vector<8x1xf32> to vector<8x64xf32>
    %121 = arith.mulf %116, %120 : vector<8x64xf32>
    %122 = arith.truncf %121 : vector<8x64xf32> to vector<8x64xbf16>
    %cst_42 = arith.constant dense<0.000000e+00> : vector<8x8xf32>
    %123 = tpu.matmul %122, %107, %cst_42 {dimension_numbers = #tpu.dot_dimension_numbers<[1], [0], [0], [1], [0, 0, 1, 1], [], []>} : vector<8x64xbf16>, vector<64x8xbf16>, vector<8x8xf32> -> vector<8x8xf32>
    %124 = tpu.concatenate %57, %79, %101, %123 in 1 : vector<8x8xf32>, vector<8x8xf32>, vector<8x8xf32>, vector<8x8xf32> -> vector<8x32xf32>
    %125 = arith.truncf %124 : vector<8x32xf32> to vector<8x32xbf16>
    %c0_43 = arith.constant 0 : index
    %c0_44 = arith.constant 0 : index
    %126 = vector.load %arg8[%c0_43, %c0_44] : memref<32x32xbf16, #tpu.memory_space<vmem>>, vector<32x32xbf16>
    %cst_45 = arith.constant dense<0.000000e+00> : vector<8x32xf32>
    %127 = tpu.matmul %125, %126, %cst_45 {dimension_numbers = #tpu.dot_dimension_numbers<[1], [1], [0], [0], [0, 0, 1, 0], [], []>} : vector<8x32xbf16>, vector<32x32xbf16>, vector<8x32xf32> -> vector<8x32xf32>
    %c0_46 = arith.constant 0 : index
    %c0_47 = arith.constant 0 : index
    %128 = vector.load %arg9[%c0_46, %c0_47] : memref<1x32xf32, #tpu.memory_space<vmem>>, vector<1x32xf32>
    %129 = vector.broadcast %128 : vector<1x32xf32> to vector<8x32xf32>
    %130 = arith.addf %127, %129 : vector<8x32xf32>
    %131 = arith.addf %1, %130 : vector<8x32xf32>
    %cst_48 = arith.constant dense<0.000000e+00> : vector<8xf32>
    %132 = vector.multi_reduction <add>, %131, %cst_48 [1] : vector<8x32xf32> to vector<8xf32>
    %133 = vector.shape_cast %132 : vector<8xf32> to vector<8x1xf32>
    %cst_49 = arith.constant 3.200000e+01 : f32
    %134 = vector.broadcast %cst_49 : f32 to vector<8x1xf32>
    %135 = arith.divf %133, %134 : vector<8x1xf32>
    %136 = vector.broadcast %135 : vector<8x1xf32> to vector<8x32xf32>
    %137 = arith.subf %131, %136 : vector<8x32xf32>
    %138 = arith.mulf %137, %137 : vector<8x32xf32>
    %cst_50 = arith.constant dense<0.000000e+00> : vector<8xf32>
    %139 = vector.multi_reduction <add>, %138, %cst_50 [1] : vector<8x32xf32> to vector<8xf32>
    %140 = vector.shape_cast %139 : vector<8xf32> to vector<8x1xf32>
    %cst_51 = arith.constant 3.200000e+01 : f32
    %141 = vector.broadcast %cst_51 : f32 to vector<8x1xf32>
    %142 = arith.divf %140, %141 : vector<8x1xf32>
    %cst_52 = arith.constant 9.99999974E-6 : f32
    %143 = vector.broadcast %cst_52 : f32 to vector<8x1xf32>
    %144 = arith.addf %142, %143 : vector<8x1xf32>
    %145 = math.rsqrt %144 : vector<8x1xf32>
    %146 = vector.broadcast %145 : vector<8x1xf32> to vector<8x32xf32>
    %147 = arith.mulf %137, %146 : vector<8x32xf32>
    %c0_53 = arith.constant 0 : index
    %c0_54 = arith.constant 0 : index
    %148 = vector.load %arg10[%c0_53, %c0_54] : memref<1x32xf32, #tpu.memory_space<vmem>>, vector<1x32xf32>
    %149 = vector.broadcast %148 : vector<1x32xf32> to vector<8x32xf32>
    %150 = arith.mulf %147, %149 : vector<8x32xf32>
    %c0_55 = arith.constant 0 : index
    %c0_56 = arith.constant 0 : index
    %151 = vector.load %arg11[%c0_55, %c0_56] : memref<1x32xf32, #tpu.memory_space<vmem>>, vector<1x32xf32>
    %152 = vector.broadcast %151 : vector<1x32xf32> to vector<8x32xf32>
    %153 = arith.addf %150, %152 : vector<8x32xf32>
    %c0_57 = arith.constant 0 : index
    %c0_58 = arith.constant 0 : index
    %c0_59 = arith.constant 0 : index
    %154 = vector.load %arg12[%c0_57, %c0_58, %c0_59] : memref<1x8x32xf32, #tpu.memory_space<vmem>>, vector<1x8x32xf32>
    %155 = vector.shape_cast %154 : vector<1x8x32xf32> to vector<8x32xf32>
    %156 = vector.shape_cast %153 : vector<8x32xf32> to vector<1x8x32xf32>
    tpu.vector_store %arg12[%c0_57, %c0_58, %c0_59], %156 {strides = array<i32>} : memref<1x8x32xf32, #tpu.memory_space<vmem>>, vector<1x8x32xf32>,
    return
  }
  func.func @transform_0(%arg0: i32) -> (i32, i32, i32) {
    %c0_i32 = arith.constant 0 : i32
    %c0_i32_0 = arith.constant 0 : i32
    %c0_i32_1 = arith.constant 0 : i32
    return %arg0, %c0_i32, %c0_i32_0 : i32, i32, i32
  }
  func.func @transform_1(%arg0: i32) -> (i32, i32, i32) {
    %c0_i32 = arith.constant 0 : i32
    %c0_i32_0 = arith.constant 0 : i32
    %c0_i32_1 = arith.constant 0 : i32
    return %arg0, %c0_i32, %c0_i32_0 : i32, i32, i32
  }
  func.func @transform_2(%arg0: i32) -> (i32, i32, i32) {
    %c0_i32 = arith.constant 0 : i32
    %c0_i32_0 = arith.constant 0 : i32
    %c0_i32_1 = arith.constant 0 : i32
    return %arg0, %c0_i32, %c0_i32_0 : i32, i32, i32
  }
  func.func @transform_3(%arg0: i32) -> (i32, i32, i32) {
    %c0_i32 = arith.constant 0 : i32
    %c0_i32_0 = arith.constant 0 : i32
    %c0_i32_1 = arith.constant 0 : i32
    return %arg0, %c0_i32, %c0_i32_0 : i32, i32, i32
  }
  func.func @transform_4(%arg0: i32) -> (i32, i32, i32) {
    %c0_i32 = arith.constant 0 : i32
    %c0_i32_0 = arith.constant 0 : i32
    %c0_i32_1 = arith.constant 0 : i32
    return %arg0, %c0_i32, %c0_i32_0 : i32, i32, i32
  }
  func.func @transform_5(%arg0: i32) -> (i32, i32) {
    %c0_i32 = arith.constant 0 : i32
    %c0_i32_0 = arith.constant 0 : i32
    %c0_i32_1 = arith.constant 0 : i32
    return %c0_i32, %c0_i32_0 : i32, i32
  }
  func.func @transform_6(%arg0: i32) -> (i32, i32) {
    %c0_i32 = arith.constant 0 : i32
    %c0_i32_0 = arith.constant 0 : i32
    %c0_i32_1 = arith.constant 0 : i32
    return %c0_i32, %c0_i32_0 : i32, i32
  }
  func.func @transform_7(%arg0: i32) -> (i32, i32) {
    %c0_i32 = arith.constant 0 : i32
    %c0_i32_0 = arith.constant 0 : i32
    %c0_i32_1 = arith.constant 0 : i32
    return %c0_i32, %c0_i32_0 : i32, i32
  }
  func.func @transform_8(%arg0: i32) -> (i32, i32) {
    %c0_i32 = arith.constant 0 : i32
    %c0_i32_0 = arith.constant 0 : i32
    %c0_i32_1 = arith.constant 0 : i32
    return %c0_i32, %c0_i32_0 : i32, i32
  }
  func.func @transform_9(%arg0: i32) -> (i32, i32) {
    %c0_i32 = arith.constant 0 : i32
    %c0_i32_0 = arith.constant 0 : i32
    %c0_i32_1 = arith.constant 0 : i32
    return %c0_i32, %c0_i32_0 : i32, i32
  }
  func.func @transform_10(%arg0: i32) -> (i32, i32) {
    %c0_i32 = arith.constant 0 : i32
    %c0_i32_0 = arith.constant 0 : i32
    %c0_i32_1 = arith.constant 0 : i32
    return %c0_i32, %c0_i32_0 : i32, i32
  }
  func.func @transform_11(%arg0: i32) -> (i32, i32, i32) {
    %c0_i32 = arith.constant 0 : i32
    %c0_i32_0 = arith.constant 0 : i32
    %c0_i32_1 = arith.constant 0 : i32
    return %arg0, %c0_i32, %c0_i32_0 : i32, i32, i32
  }
}

</mosaic_0001>

<bundles_post_ra>
// kernel: tpu_custom_call.1
= control target key start
LH: loop header
LB: loop body
LE: loop exit
PB: predicated region body
PF: predicated region fallthrough
CT: control target
= control target key end

     0   :  { %s2415_s0 = inlined_call_operand.vmem [shape: f32[2,8,32], index: 0, kind: input, shape index: {}]   ;;  %s2416_s1 = inlined_call_operand.vmem [shape: f32[2,8,32], index: 1, kind: input, shape index: {}]   ;;  %s2417_s2 = inlined_call_operand.vmem [shape: f32[2,64,32], index: 2, kind: input, shape index: {}]   ;;  %s2418_s3 = inlined_call_operand.vmem [shape: f32[2,64,32], index: 3, kind: input, shape index: {}]   ;;  %s2419_s4 = inlined_call_operand.vmem [shape: s32[2,8,64], index: 4, kind: input, shape index: {}]   ;;  %s2420_s5 = inlined_call_operand.vmem [shape: bf16[96,32], index: 5, kind: input, shape index: {}]   ;;  %s2421_s6 = inlined_call_operand.vmem [shape: f32[1,96], index: 6, kind: input, shape index: {}]   ;;  %s2422_s7 = inlined_call_operand.vmem [shape: bf16[32,32], index: 7, kind: input, shape index: {}]   ;;  %s2423_s8 = inlined_call_operand.vmem [shape: f32[1,32], index: 8, kind: input, shape index: {}]   ;;  %s2424_s9 = inlined_call_operand.vmem [shape: f32[1,32], index: 9, kind: input, shape index: {}]   ;;  %s2425_s10 = inlined_call_operand.vmem [shape: f32[1,32], index: 10, kind: input, shape index: {}]   ;;  %s2426_s11 = inlined_call_operand.hbm [shape: f32[2,8,32], index: 11, kind: output, shape index: {}]  }
   0x1   :  { %2427 = sst [smem:[#allocation5_spill]] %s2415_s0 }
   0x2   :  { %2428 = sst [smem:[#allocation6_spill]] %s2421_s6 }
   0x3   :  { %16 = vsyncpa [#allocation3], 0 }
   0x4   :  { %18 = vsyncpa [#allocation3 + $0x1], 0  ;;  %s1998_s17 = smov 0   ;;  %s2000_s18 = smov 0  }
   0x5   :  { %s2002_s19 = smov 0   ;;  %s2004_s20 = smov 0  }
   0x6 LB: > { %s2019_s21 = sadd.s32 4294967295, %s1925_s20   ;;  %s1542_s22 = sadd.s32 4294967294, %s1925_s20   ;;  %s1925_s20 = sphi %s2004_s20, %s2436_s20   ;;  %s1921_s19 = sphi %s2002_s19, %s2435_s19   ;;  %s1917_s18 = sphi %s2000_s18, %s2434_s18   ;;  %s1913_s17 = sphi %s1998_s17, %s2433_s17  }
   0x7   : > { %s2023_s23 = sadd.s32 1, %s1925_s20   ;;  %s287_s24 = sadd.s32 1, %s1921_s19 }
   0x8   : > { %s284_s25 = ssub.s32 %s1925_s20, %s2023_s23  ;;  %p297_p0 = scmp.ne.s32.totalorder %s1921_s19, %s1917_s18 }
   0x9   : > { %p285_p1 = scmp.eq.s32.totalorder %s284_s25, 0  ;;  %p298_p2 = scmp.eq.s32.totalorder %s2019_s21, 1 }
   0xa   : > { %p303_p3 = scmp.ne.s32.totalorder %s1917_s18, %s1913_s17  ;;  %p304_p4 = scmp.eq.s32.totalorder %s1542_s22, 1 }
   0xb   : > { %s2034_s26 = scalar_select %p285_p1, %s1921_s19, %s287_s24  }
   0xc   : > { %p2036_p5 = por %p298_p2, %p297_p0  ;;  %p2040_p6 = por %p304_p4, %p303_p3 }
   0xd   : > { %p1545_p7 = scmp.ge.s32.totalorder %s1925_s20, 1  ;;  %p377_p8 = scmp.lt.s32.totalorder %s1925_s20, 3 }
   0xf   : > { %p378_p9 = pnand %p1545_p7, %p377_p8 }
  0x10   : > { %vm514_vm0 = vcmask (!%p378_p9), 261120   ;;  %v1837_v0 = vld [vmem:[%s2420_s5 + $0x10] sm:$0xff] (!%p378_p9)   ;;  %v1838_v1 = vld [vmem:[%s2420_s5 + $0x18] sm:$0xff] (!%p378_p9)   ;;  %p434_p10 = scmp.lt.s32.totalorder (!%p378_p9), %s2019_s21, 1  ;;  %v1927_v3 = vmov (!%p378_p9), 0.0   ;;  %v1839_v4 = vld [vmem:[%s2420_s5] sm:$0xff] (!%p378_p9)  }
  0x11   : > { %381 = sbr.rel (%p378_p9) target bundleno = 3388 (0xd3c), region = 64  ;;  %1784 = vmatprep.subr.msk.bf16.mxu1 (!%p378_p9), %vm514_vm0, %v1837_v0  ;;  %v594_v2 = vsel (!%p378_p9), %vm514_vm0, %v1837_v0, 0  ;;  %1648 = vmatprep.subr.bf16.mxu0 (!%p378_p9), %v1927_v3  ;;  %s2431_s6 = sld [smem:[#allocation6_spill]] (!%p378_p9)  ;;  %v519_v6 = vsel (!%p378_p9), %vm514_vm0, %v1839_v4, 0  ;;  %v1840_v7 = vld [vmem:[%s2420_s5 + $0x8] sm:$0xff] (!%p378_p9)   ;;  %vm1928_vm1 = vmmov (!%p378_p9), 0  }
  0x12   : > { %1657 = vmatpush3.bf16.xpose.msra.mxu1 (!%p378_p9), %v594_v2  ;;  %1652 = vmatprep.mubr.msk.bf16.mxu0 (!%p378_p9), %vm1928_vm1, %v1927_v3  ;;  %s1929_s13 = smov (!%p378_p9), 96   ;;  %v597_v11 = vsel (!%p378_p9), %vm514_vm0, %v1838_v1, 0  ;;  %s2432_s0 = sld [smem:[#allocation5_spill]] (!%p378_p9)  ;;  %v522_v29 = vsel (!%p378_p9), %vm514_vm0, %v1840_v7, 0  ;;  %v1841_v44 = vld [vmem:[%s2420_s5 + $0x20] sm:$0xff] (!%p378_p9)   ;;  %vm776_vm2 = vcmask (!%p378_p9), 64512  }
  0x13   : > { %1785 = vmatprep.subr.msk.bf16.mxu1 (!%p378_p9), %vm514_vm0, %v1838_v1  ;;  %1649 = vmatpush3.bf16.xpose.msra.mxu0 (!%p378_p9), %v519_v6  ;;  %s1930_s16 = smov (!%p378_p9), 64   ;;  %v694_v45 = vsel (!%p378_p9), %vm514_vm0, %v1841_v44, 0  ;;  %vm834_vm4 = vcmask (!%p378_p9), 523264   ;;  %vm1314_vm5 = vcmask (!%p378_p9), 130048   ;;  %vm1316_vm6 = vcmask (!%p378_p9), 195584  }
  0x14   : > { %1650 = vmatprep.subr.bf16.mxu0 (!%p378_p9), %v1927_v3 }
  0x17   : > { %v2064_v5 = vld [vmem:[%s2431_s6] ss:$0 sm:$0xff] (!%p378_p9)  ;;  %s1585_s6 = sshll.u32 (!%p378_p9), %s2019_s21, 7 }
  0x18   : > { %s435_s14 = scalar_select %p434_p10, %s2019_s21, 1  ;;  %578 = vrot.lane.b32.xlu0 %v2064_v5, %s1929_s13  ;;  %678 = vrot.lane.b32.xlu1 %v2064_v5, %s1930_s16 }
  0x19   : > { %s1934_s16 = smov 8   ;;  %s1937_s21 = smov [#allocation2]  }
  0x1a   : > { %s1588_s25 = sshll.u32 %s435_s14, 6  ;;  %s2072_s12 = sshll.u32 %s435_s14, 3  ;;  %1659 = vmatpush3.bf16.xpose.msra.mxu1 %v597_v11 }
  0x1b   : > { %s2078_s22 = scalar_lea.vmem %s2417_s2, %s1588_s25  ;;  %s2083_s29 = scalar_lea.vmem %s2418_s3, %s1588_s25  ;;  %1680 = vmatprep.subr.bf16.mxu1 %v1927_v3  ;;  %1651 = vmatpush3.bf16.xpose.msra.mxu0 %v522_v29 }
  0x1c   : > { %v460_v8 = vld [vmem:[%s2078_s22] sm:$0xff]  ;;  %v461_v9 = vld [vmem:[%s2078_s22 + $0x8] sm:$0xff]  ;;  %v2092_v14 = vld [vmem:[%s2078_s22 + $0x10] sm:$0xff]  ;;  %s437_s25 = scalar_lea.vmem %s2432_s0, %s2072_s12  ;;  %s441_s15 = scalar_lea.vmem %s2416_s1, %s2072_s12  ;;  %1786 = vmatprep.subr.msk.bf16.mxu0 %vm514_vm0, %v1841_v44 }
  0x1d   : > { %v468_v10 = vld [vmem:[%s2083_s29] sm:$0xff]  ;;  %v469_v12 = vld [vmem:[%s2083_s29 + $0x8] sm:$0xff]  ;;  %v2095_v15 = vld [vmem:[%s2078_s22 + $0x18] sm:$0xff]  ;;  %v664_v40 = vpack.c.bf16 %v461_v9, %v460_v8  ;;  %s455_s13 = scalar_lea.vmem %s2419_s4, %s2072_s12  ;;  %s1932_s12 = smov 112  }
  0x1e   : > { %v476_v13 = vadd.f32 %v468_v10, %v460_v8  ;;  %v477_v16 = vadd.f32 %v469_v12, %v461_v9  ;;  %v470_v17 = vld [vmem:[%s2083_s29 + $0x10] sm:$0xff]  ;;  %v471_v18 = vld [vmem:[%s2083_s29 + $0x18] sm:$0xff]  ;;  %v665_v19 = vpack.c.bf16 %v2095_v15, %v2092_v14  ;;  %v2102_v20 = vld [vmem:[%s2078_s22 + $0x20] sm:$0xff]  ;;  %s2372_s0 = scalar_lea.hbm %s2426_s11, %s1585_s6 }
  0x1f   : > { %v478_v21 = vadd.f32 %v470_v17, %v2092_v14  ;;  %v479_v22 = vadd.f32 %v471_v18, %v2095_v15  ;;  %v2115_v23 = vld [vmem:[%s2078_s22 + $0x28] sm:$0xff]  ;;  %v472_v24 = vld [vmem:[%s2083_s29 + $0x20] sm:$0xff]  ;;  %v2128_v34 = vld [vmem:[%s2078_s22 + $0x30] sm:$0xff] }
  0x20   : > { %v473_v25 = vld [vmem:[%s2083_s29 + $0x28] sm:$0xff]  ;;  %v564_v26 = vpack.c.bf16 %v477_v16, %v476_v13  ;;  %v480_v27 = vadd.f32 %v472_v24, %v2102_v20  ;;  %v2122_v30 = vld [vmem:[%s437_s25] sm:$0xff]  ;;  %v2131_v36 = vld [vmem:[%s2078_s22 + $0x38] sm:$0xff]  ;;  %v666_v18 = vpack.c.bf16 %v2115_v23, %v2102_v20  ;;  %s1935_s22 = smov 16   ;;  %s1936_s25 = smov 24  }
  0x21   : > { %v481_v28 = vadd.f32 %v473_v25, %v2115_v23  ;;  %v458_v31 = vld [vmem:[%s441_s15] sm:$0xff]  ;;  %v565_v33 = vpack.c.bf16 %v479_v22, %v478_v21  ;;  %v474_v37 = vld [vmem:[%s2083_s29 + $0x30] sm:$0xff]  ;;  %v475_v38 = vld [vmem:[%s2083_s29 + $0x38] sm:$0xff]  ;;  %s1931_s29 = smov 120   ;;  %v667_v21 = vpack.c.bf16 %v2131_v36, %v2128_v34  ;;  %s1933_s15 = smov 104  }
  0x22   : > { %1660 = vmatprep.mubr.msk.bf16.mxu1 %vm514_vm0, %v564_v26  ;;  %v459_v32 = vadd.f32 %v458_v31, %v2122_v30  ;;  %v482_v41 = vadd.f32 %v474_v37, %v2128_v34  ;;  %v483_v42 = vadd.f32 %v475_v38, %v2131_v36  ;;  %v1842_v17 = vld [vmem:[%s2420_s5 + $0x28] sm:$0xff]   ;;  %v764_v20 = vld [vmem:[%s455_s13] sm:$0xff] }
  0x23   : > { %v566_v35 = vpack.c.bf16 %v481_v28, %v480_v27  ;;  %1661 = vmatmul.mubr.msk.bf16.vlgmr.msra.gmra.mrb[0].mxu1 %vm514_vm0, %v565_v33  ;;  %vm765_vm3 = vcmp.ne.s32.totalorder %v764_v20, 0 }
  0x24   : > { %v497_v39 = vpack.c.bf16 %v459_v32, %v459_v32  ;;  %v567_v43 = vpack.c.bf16 %v483_v42, %v482_v41  ;;  %v2202_v14 = vsel %vm765_vm3, -1e+30, %v1927_v3 }
  0x25   : > { %1664 = vmatprep.mubr.msk.bf16.mxu1 %vm514_vm0, %v566_v35 }
  0x26   : > { %1653 = vmatmul.mubr.msk.bf16.vlgmr.msra.gmra.mrb[0].mxu0 %vm514_vm0, %v497_v39 }
  0x27   : > { %1672 = vmatprep.mubr.msk.bf16.mxu0 %vm514_vm0, %v664_v40  ;;  %1669 = vmatpush3.bf16.xpose.msra.mxu0 %v694_v45 }
  0x28   : > { %1787 = vmatprep.subr.msk.bf16.mxu0 %vm514_vm0, %v1842_v17 }
  0x2b   : > { %1665 = vmatmul.mubr.msk.bf16.gmra.mrb[4].mxu1 %vm514_vm0, %v567_v43 }
  0x2c   : > { %1688 = vmatprep.mubr.msk.bf16.mxu1 %vm1928_vm1, %v1927_v3 }
  0x8a   : > { %v579_v46 = vpop.permute.xlu0 %578  ;;  %v679_v27 = vpop.permute.xlu1 %678 }
  0xf6   : > { %v1662_v47 = vpop.f32.mrb[0].mxu1 }
  0xf7   : > { %v633_v48 = vpop.f32.mrb[1].mxu1  ;;  %v642_v50 = vadd.f32 %v1662_v47, %v579_v46 }
  0xf8   : > { %v1663_v49 = vpop.f32.mrb[2].mxu1  ;;  %v634_v54 = vadd.f32 %v633_v48, %v579_v46 }
  0xf9   : > { %v645_v51 = vadd.f32 %v1663_v49, %v579_v46  ;;  %v636_v52 = vpop.f32.mrb[3].mxu1  ;;  %v558_v53 = vpop.f32.mrb[0].mxu0 }
  0xfa   : > { %v637_v55 = vadd.f32 %v636_v52, %v579_v46  ;;  %v1654_v56 = vpop.f32.mrb[1].mxu0  ;;  %v559_v12 = vadd.f32 %v2064_v5, %v558_v53  ;;  %v697_v5 = vsel %vm514_vm0, %v1842_v17, 0 }
  0xfb   : > { %v2150_v57 = vpack.c.bf16 %v645_v51, %v642_v50  ;;  %v561_v58 = vpop.f32.mrb[2].mxu0  ;;  %1671 = vmatpush3.bf16.xpose.msra.mxu0 %v697_v5 }
  0xfc   : > { %v2152_v59 = vpack.c.bf16 %v637_v55, %v634_v54  ;;  %v1655_v60 = vpop.f32.mrb[3].mxu0  ;;  %v2173_v16 = vpack.c.bf16 %v559_v12, %v559_v12  ;;  %1692 = vmatprep.subr.bf16.mxu0 %v1927_v3 }
  0xfd   : > { %v784_v10 = vsel %vm776_vm2, %v2150_v57, 0 }
  0xfe   : > { %v1666_v61 = vpop.f32.mrb[4].mxu1  ;;  %897 = vrot.lane.b32.xlu1 %v2152_v59, %s1931_s29  ;;  %v781_v62 = vsel %vm776_vm2, %v2152_v59, 0 }
  0xff   : > { %v649_v63 = vpop.f32.mrb[5].mxu1  ;;  %1681 = vmatpush3.bf16.xpose.msra.mxu1 %v781_v62  ;;  %v658_v1 = vadd.f32 %v1666_v61, %v579_v46 }
 0x100   : > { %v1667_v0 = vpop.f32.mrb[6].mxu1  ;;  %1682 = vmatprep.subr.bf16.mxu1 %v1927_v3  ;;  %v650_v6 = vadd.f32 %v649_v63, %v579_v46 }
 0x101   : > { %v661_v2 = vadd.f32 %v1667_v0, %v579_v46  ;;  %v652_v4 = vpop.f32.mrb[7].mxu1 }
 0x102   : > { %v653_v7 = vadd.f32 %v652_v4, %v579_v46  ;;  %1673 = vmatmul.mubr.msk.bf16.vlgmr.msra.gmra.mrb[4].mxu0 %vm514_vm0, %v665_v19 }
 0x103   : > { %v2159_v8 = vpack.c.bf16 %v661_v2, %v658_v1  ;;  %1676 = vmatprep.mubr.msk.bf16.mxu0 %vm514_vm0, %v666_v18 }
 0x104   : > { %v2161_v9 = vpack.c.bf16 %v653_v7, %v650_v6 }
 0x105   : > { %v790_v13 = vsel %vm776_vm2, %v2159_v8, 0 }
 0x106   : > { %v787_v11 = vsel %vm776_vm2, %v2161_v9, 0 }
 0x107   : > { %1683 = vmatpush3.bf16.xpose.msra.mxu1 %v784_v10 }
 0x108   : > { %1684 = vmatprep.subr.bf16.mxu1 %v1927_v3 }
 0x10a   : > { %1677 = vmatmul.mubr.msk.bf16.gmra.mrb[8].mxu0 %vm514_vm0, %v667_v21 }
 0x10b   : > { %1700 = vmatprep.mubr.msk.bf16.mxu0 %vm1928_vm1, %v1927_v3 }
 0x10f   : > { %1685 = vmatpush3.bf16.xpose.msra.mxu1 %v787_v11 }
 0x110   : > { %1686 = vmatprep.subr.bf16.mxu1 %v1927_v3 }
 0x117   : > { %1687 = vmatpush3.bf16.xpose.msra.mxu1 %v790_v13 }
 0x118   : > { %1716 = vmatprep.subr.bf16.mxu1 %v1927_v3 }
 0x11e   : > { %1689 = vmatmul.mubr.msk.bf16.vlgmr.msra.gmra.mrb[8].mxu1 %vm776_vm2, %v2173_v16 }
 0x11f   : > { %1724 = vmatprep.mubr.msk.bf16.mxu1 %vm1928_vm1, %v1927_v3 }
 0x170   : > { %v898_v54 = vpop.permute.xlu1 %897 }
 0x171   : > { %v909_v61 = vsel %vm776_vm2, %v898_v54, 0 }
 0x1d5   : > { %v1674_v28 = vpop.f32.mrb[4].mxu0 }
 0x1d6   : > { %v742_v29 = vadd.f32 %v1674_v28, %v679_v27  ;;  %v733_v31 = vpop.f32.mrb[5].mxu0 }
 0x1d7   : > { %v734_v32 = vadd.f32 %v733_v31, %v679_v27  ;;  %v1675_v33 = vpop.f32.mrb[6].mxu0 }
 0x1d8   : > { %v745_v34 = vadd.f32 %v1675_v33, %v679_v27  ;;  %v736_v35 = vpop.f32.mrb[7].mxu0 }
 0x1d9   : > { %v737_v36 = vadd.f32 %v736_v35, %v679_v27 }
 0x1da   : > { %v2208_v37 = vpack.c.bf16 %v745_v34, %v742_v29 }
 0x1db   : > { %v2210_v38 = vpack.c.bf16 %v737_v36, %v734_v32 }
 0x1dd   : > { %v1678_v39 = vpop.f32.mrb[8].mxu0  ;;  %1693 = vmatpush3.bf16.msra.mxu0 %v2210_v38 }
 0x1de   : > { %v758_v40 = vadd.f32 %v1678_v39, %v679_v27  ;;  %v749_v41 = vpop.f32.mrb[9].mxu0  ;;  %1694 = vmatprep.subr.bf16.mxu0 %v1927_v3 }
 0x1df   : > { %v750_v42 = vadd.f32 %v749_v41, %v679_v27  ;;  %v1679_v43 = vpop.f32.mrb[10].mxu0 }
 0x1e0   : > { %v761_v44 = vadd.f32 %v1679_v43, %v679_v27  ;;  %v752_v45 = vpop.f32.mrb[11].mxu0 }
 0x1e1   : > { %v753_v46 = vadd.f32 %v752_v45, %v679_v27  ;;  %1695 = vmatpush3.bf16.msra.mxu0 %v2208_v37 }
 0x1e2   : > { %v2215_v47 = vpack.c.bf16 %v761_v44, %v758_v40  ;;  %1696 = vmatprep.subr.bf16.mxu0 %v1927_v3 }
 0x1e3   : > { %v2218_v48 = vpack.c.bf16 %v753_v46, %v750_v42 }
 0x1e5   : > { %1697 = vmatpush3.bf16.msra.mxu0 %v2218_v48 }
 0x1e6   : > { %1698 = vmatprep.subr.bf16.mxu0 %v1927_v3 }
 0x1e9   : > { %1699 = vmatpush3.bf16.msra.mxu0 %v2215_v47 }
 0x1ea   : > { %1704 = vmatprep.subr.bf16.mxu0 %v1927_v3 }
 0x1f1   : > { %v826_v22 = vpop.f32.mrb[8].mxu1 }
 0x1f2   : > { %v832_v15 = vmul.f32 0.35355338, %v826_v22  ;;  %v1690_v19 = vpop.f32.mrb[9].mxu1 }
 0x1f3   : > { %v829_v23 = vpop.f32.mrb[10].mxu1 }
 0x1f4   : > { %v1691_v24 = vpop.f32.mrb[11].mxu1  ;;  %v833_v25 = vadd.f32 %v832_v15, %v2202_v14 }
 0x1f6   : > { %v835_v26 = vsel %vm834_vm4, %v833_v25, -inf }
 0x1f7   : > { %836 = vmax.xlane.f32.xlu0 %v835_v26 }
 0x20d   : > { %891 = vrot.lane.b32.xlu0 %v2173_v16, %s1931_s29 }
 0x284   : > { %v837_v49 = vpop.xlane.xlu0 %836 }
 0x285   : > { %v838_v50 = vsub.f32 %v833_v25, %v837_v49 }
 0x287   : > { %v839_v51 = vmul.f32 1.442695, %v838_v50 }
 0x288   : > { %v892_v6 = vpop.permute.xlu0 %891 }
 0x289   : > { %1845 = vpow2.f32 %v839_v51 }
 0x293   : > { %v1846_v52 = vpop.eup %1845 }
 0x294   : > { %v841_v53 = vsel %vm834_vm4, %v1846_v52, 0.0 }
 0x295   : > { %842 = vadd.xlane.f32.xlu1 %v841_v53 }
 0x2a6   : > { %899 = vrot.lane.b32.xlu1 %v2150_v57, %s1931_s29 }
 0x2aa   : > { %901 = vrot.lane.b32.xlu1 %v2161_v9, %s1931_s29 }
 0x2ae   : > { %903 = vrot.lane.b32.xlu1 %v2159_v8, %s1931_s29 }
 0x322   : > { %v843_v55 = vpop.xlane.xlu1 %842 }
 0x323   : > { %1847 = vrcp.f32 %v843_v55 }
 0x326   : > { %v900_v62 = vpop.permute.xlu1 %899 }
 0x327   : > { %v912_v63 = vsel %vm776_vm2, %v900_v62, 0 }
 0x32a   : > { %v902_v0 = vpop.permute.xlu1 %901 }
 0x32b   : > { %v915_v1 = vsel %vm776_vm2, %v902_v0, 0 }
 0x32d   : > { %v1848_v56 = vpop.eup %1847 }
 0x32e   : > { %v845_v58 = vmul.f32 %v1848_v56, %v1846_v52  ;;  %v904_v2 = vpop.permute.xlu1 %903 }
 0x32f   : > { %v918_v4 = vsel %vm776_vm2, %v904_v2, 0 }
 0x330   : > { %v846_v60 = vpack.c.bf16 %v845_v58, %v845_v58 }
 0x332   : > { %1701 = vmatmul.mubr.msk.bf16.vlgmr.msra.gmra.mrb[12].mxu0 %vm834_vm4, %v846_v60 }
 0x333   : > { %1705 = vmatpush3.bf16.xpose.msra.mxu0 %v909_v61  ;;  %1712 = vmatprep.mubr.msk.bf16.mxu0 %vm1928_vm1, %v1927_v3 }
 0x334   : > { %1706 = vmatprep.subr.bf16.mxu0 %v1927_v3 }
 0x33b   : > { %1707 = vmatpush3.bf16.xpose.msra.mxu0 %v912_v63 }
 0x33c   : > { %1708 = vmatprep.subr.bf16.mxu0 %v1927_v3 }
 0x343   : > { %1709 = vmatpush3.bf16.xpose.msra.mxu0 %v915_v1 }
 0x344   : > { %1710 = vmatprep.subr.bf16.mxu0 %v1927_v3 }
 0x34b   : > { %1711 = vmatpush3.bf16.xpose.msra.mxu0 %v918_v4 }
 0x34c   : > { %1740 = vmatprep.subr.bf16.mxu0 %v1927_v3 }
 0x352   : > { %1713 = vmatmul.mubr.msk.bf16.vlgmr.msra.gmra.mrb[16].mxu0 %vm776_vm2, %v892_v6 }
 0x353   : > { %1748 = vmatprep.mubr.msk.bf16.mxu0 %vm1928_vm1, %v1927_v3 }
 0x405   : > { %v2245_v7 = vpop.f32.mrb[12].mxu0 }
 0x406   : > { %v1702_v10 = vpop.f32.mrb[13].mxu0 }
 0x407   : > { %v887_v11 = vpop.f32.mrb[14].mxu0 }
 0x408   : > { %v1703_v12 = vpop.f32.mrb[15].mxu0 }
 0x425   : > { %v954_v13 = vpop.f32.mrb[16].mxu0 }
 0x426   : > { %v960_v17 = vmul.f32 0.35355338, %v954_v13  ;;  %v1714_v5 = vpop.f32.mrb[17].mxu0 }
 0x427   : > { %v957_v18 = vpop.f32.mrb[18].mxu0 }
 0x428   : > { %v1715_v21 = vpop.f32.mrb[19].mxu0  ;;  %v961_v20 = vadd.f32 %v960_v17, %v2202_v14 }
 0x42a   : > { %v962_v22 = vsel %vm834_vm4, %v961_v20, -inf }
 0x42b   : > { %963 = vmax.xlane.f32.xlu1 %v962_v22 }
 0x43c   : > { %978 = vrot.lane.b32.xlu1 %v2210_v38, %s1931_s29 }
 0x440   : > { %982 = vrot.lane.b32.xlu1 %v2218_v48, %s1931_s29 }
 0x444   : > { %984 = vrot.lane.b32.xlu1 %v2215_v47, %s1931_s29 }
 0x448   : > { %1035 = vrot.lane.b32.xlu1 %v2152_v59, %s1932_s12 }
 0x44c   : > { %1037 = vrot.lane.b32.xlu1 %v2150_v57, %s1932_s12 }
 0x450   : > { %1039 = vrot.lane.b32.xlu1 %v2161_v9, %s1932_s12 }
 0x454   : > { %1033 = vrot.lane.b32.xlu1 %v2173_v16, %s1932_s12 }
 0x458   : > { %1114 = vrot.lane.b32.xlu1 %v2208_v37, %s1932_s12 }
 0x45c   : > { %1118 = vrot.lane.b32.xlu1 %v2215_v47, %s1932_s12 }
 0x4b8   : > { %v964_v15 = vpop.xlane.xlu1 %963 }
 0x4b9   : > { %v965_v19 = vsub.f32 %v961_v20, %v964_v15 }
 0x4bb   : > { %v966_v23 = vmul.f32 1.442695, %v965_v19 }
 0x4bc   : > { %v979_v24 = vpop.permute.xlu1 %978 }
 0x4bd   : > { %1849 = vpow2.f32 %v966_v23  ;;  %1717 = vmatpush3.bf16.msra.mxu1 %v979_v24 }
 0x4be   : > { %1718 = vmatprep.subr.bf16.mxu1 %v1927_v3 }
 0x4c0   : > { %v983_v29 = vpop.permute.xlu1 %982 }
 0x4c4   : > { %v985_v32 = vpop.permute.xlu1 %984 }
 0x4c7   : > { %v1850_v25 = vpop.eup %1849 }
 0x4c8   : > { %v968_v26 = vsel %vm834_vm4, %v1850_v25, 0.0  ;;  %v1036_v35 = vpop.permute.xlu1 %1035 }
 0x4c9   : > { %969 = vadd.xlane.f32.xlu0 %v968_v26  ;;  %v1047_v36 = vsel %vm776_vm2, %v1036_v35, 0 }
 0x4cc   : > { %v1038_v39 = vpop.permute.xlu1 %1037 }
 0x4cd   : > { %v1050_v40 = vsel %vm776_vm2, %v1038_v39, 0 }
 0x4d0   : > { %v1040_v41 = vpop.permute.xlu1 %1039 }
 0x4d1   : > { %v1053_v42 = vsel %vm776_vm2, %v1040_v41, 0 }
 0x4d4   : > { %v1034_v45 = vpop.permute.xlu1 %1033 }
 0x4d8   : > { %v1115_v1 = vpop.permute.xlu1 %1114 }
 0x4df   : > { %980 = vrot.lane.b32.xlu0 %v2208_v37, %s1931_s29 }
 0x4e3   : > { %1041 = vrot.lane.b32.xlu0 %v2159_v8, %s1932_s12 }
 0x556   : > { %v970_v27 = vpop.xlane.xlu0 %969 }
 0x557   : > { %1851 = vrcp.f32 %v970_v27 }
 0x55a   : > { %v981_v28 = vpop.permute.xlu0 %980 }
 0x55b   : > { %1719 = vmatpush3.bf16.msra.mxu1 %v981_v28 }
 0x55c   : > { %1720 = vmatprep.subr.bf16.mxu1 %v1927_v3 }
 0x55e   : > { %v1042_v43 = vpop.permute.xlu0 %1041 }
 0x55f   : > { %1721 = vmatpush3.bf16.msra.mxu1 %v983_v29  ;;  %v1056_v44 = vsel %vm776_vm2, %v1042_v43, 0 }
 0x560   : > { %1722 = vmatprep.subr.bf16.mxu1 %v1927_v3 }
 0x561   : > { %v1852_v31 = vpop.eup %1851 }
 0x562   : > { %v972_v33 = vmul.f32 %v1852_v31, %v1850_v25 }
 0x563   : > { %1723 = vmatpush3.bf16.msra.mxu1 %v985_v32 }
 0x564   : > { %v973_v34 = vpack.c.bf16 %v972_v33, %v972_v33  ;;  %1728 = vmatprep.subr.bf16.mxu1 %v1927_v3 }
 0x566   : > { %1725 = vmatmul.mubr.msk.bf16.vlgmr.msra.gmra.mrb[12].mxu1 %vm834_vm4, %v973_v34 }
 0x567   : > { %1736 = vmatprep.mubr.msk.bf16.mxu1 %vm1928_vm1, %v1927_v3 }
 0x56c   : > { %1729 = vmatpush3.bf16.xpose.msra.mxu1 %v1047_v36 }
 0x56d   : > { %1730 = vmatprep.subr.bf16.mxu1 %v1927_v3 }
 0x574   : > { %1731 = vmatpush3.bf16.xpose.msra.mxu1 %v1050_v40 }
 0x575   : > { %1732 = vmatprep.subr.bf16.mxu1 %v1927_v3 }
 0x57c   : > { %1733 = vmatpush3.bf16.xpose.msra.mxu1 %v1053_v42 }
 0x57d   : > { %1734 = vmatprep.subr.bf16.mxu1 %v1927_v3 }
 0x584   : > { %1735 = vmatpush3.bf16.xpose.msra.mxu1 %v1056_v44  ;;  %v1844_v44 = vld [vmem:[%s2422_s7 + $0x8] sm:$0xff]  }
 0x585   : > { %1764 = vmatprep.subr.bf16.mxu1 %v1927_v3 }
 0x58b   : > { %1737 = vmatmul.mubr.msk.bf16.vlgmr.msra.gmra.mrb[16].mxu1 %vm776_vm2, %v1034_v45  ;;  %v1347_v45 = vsel %vm514_vm0, %v1844_v44, 0 }
 0x58c   : > { %1772 = vmatprep.mubr.msk.bf16.mxu1 %vm1928_vm1, %v1927_v3 }
 0x639   : > { %v2290_v46 = vpop.f32.mrb[12].mxu1 }
 0x63a   : > { %v1726_v49 = vpop.f32.mrb[13].mxu1 }
 0x63b   : > { %v1030_v50 = vpop.f32.mrb[14].mxu1 }
 0x63c   : > { %v1727_v51 = vpop.f32.mrb[15].mxu1 }
 0x65e   : > { %v1092_v52 = vpop.f32.mrb[16].mxu1 }
 0x65f   : > { %v1098_v53 = vmul.f32 0.35355338, %v1092_v52  ;;  %v1738_v54 = vpop.f32.mrb[17].mxu1 }
 0x660   : > { %v1095_v55 = vpop.f32.mrb[18].mxu1 }
 0x661   : > { %v1739_v56 = vpop.f32.mrb[19].mxu1  ;;  %v1099_v58 = vadd.f32 %v1098_v53, %v2202_v14 }
 0x663   : > { %v1100_v60 = vsel %vm834_vm4, %v1099_v58, -inf }
 0x664   : > { %1101 = vmax.xlane.f32.xlu0 %v1100_v60  ;;  %v1578_v60 = vld [vmem:[%s2423_s8] ss:$0 sm:$0xff] }
 0x67a   : > { %1112 = vrot.lane.b32.xlu0 %v2210_v38, %s1932_s12 }
 0x67e   : > { %1116 = vrot.lane.b32.xlu0 %v2218_v48, %s1932_s12  ;;  %s431_s12 = sand.u32 1, %s1917_s18  }
 0x682   : > { %1169 = vrot.lane.b32.xlu0 %v2152_v59, %s1933_s15 }
 0x686   : > { %1173 = vrot.lane.b32.xlu0 %v2161_v9, %s1933_s15 }
 0x68a   : > { %1167 = vrot.lane.b32.xlu0 %v2173_v16, %s1933_s15  ;;  %v1119_v16 = vpop.permute.xlu1 %1118 }
 0x68e   : > { %1246 = vrot.lane.b32.xlu0 %v2210_v38, %s1933_s15 }
 0x6f1   : > { %v1102_v61 = vpop.xlane.xlu0 %1101 }
 0x6f2   : > { %v1103_v62 = vsub.f32 %v1099_v58, %v1102_v61 }
 0x6f4   : > { %v1104_v63 = vmul.f32 1.442695, %v1103_v62 }
 0x6f5   : > { %v1113_v0 = vpop.permute.xlu0 %1112 }
 0x6f6   : > { %1853 = vpow2.f32 %v1104_v63  ;;  %1741 = vmatpush3.bf16.msra.mxu0 %v1113_v0 }
 0x6f7   : > { %1742 = vmatprep.subr.bf16.mxu0 %v1927_v3 }
 0x6f9   : > { %v1117_v2 = vpop.permute.xlu0 %1116 }
 0x6fa   : > { %1743 = vmatpush3.bf16.msra.mxu0 %v1115_v1 }
 0x6fb   : > { %1744 = vmatprep.subr.bf16.mxu0 %v1927_v3 }
 0x6fd   : > { %v1170_v59 = vpop.permute.xlu0 %1169 }
 0x6fe   : > { %1745 = vmatpush3.bf16.msra.mxu0 %v1117_v2  ;;  %v1181_v5 = vsel %vm776_vm2, %v1170_v59, 0 }
 0x6ff   : > { %1746 = vmatprep.subr.bf16.mxu0 %v1927_v3 }
 0x700   : > { %v1854_v9 = vpop.eup %1853 }
 0x701   : > { %v1174_v38 = vpop.permute.xlu0 %1173  ;;  %v1106_v4 = vsel %vm834_vm4, %v1854_v9, 0.0 }
 0x702   : > { %1107 = vadd.xlane.f32.xlu1 %v1106_v4  ;;  %1747 = vmatpush3.bf16.msra.mxu0 %v1119_v16 }
 0x703   : > { %1752 = vmatprep.subr.bf16.mxu0 %v1927_v3 }
 0x705   : > { %v1168_v6 = vpop.permute.xlu0 %1167 }
 0x709   : > { %v1247_v10 = vpop.permute.xlu0 %1246 }
 0x70a   : > { %1765 = vmatpush3.bf16.msra.mxu1 %v1247_v10 }
 0x70b   : > { %1766 = vmatprep.subr.bf16.mxu1 %v1927_v3 }
 0x713   : > { %1171 = vrot.lane.b32.xlu1 %v2150_v57, %s1933_s15 }
 0x717   : > { %1175 = vrot.lane.b32.xlu1 %v2159_v8, %s1933_s15  ;;  %v1187_v8 = vsel %vm776_vm2, %v1174_v38, 0 }
 0x78f   : > { %v1108_v11 = vpop.xlane.xlu1 %1107 }
 0x790   : > { %1855 = vrcp.f32 %v1108_v11 }
 0x793   : > { %v1172_v18 = vpop.permute.xlu1 %1171 }
 0x794   : > { %v1184_v57 = vsel %vm776_vm2, %v1172_v18, 0 }
 0x797   : > { %v1176_v21 = vpop.permute.xlu1 %1175 }
 0x798   : > { %v1190_v20 = vsel %vm776_vm2, %v1176_v21, 0 }
 0x79a   : > { %v1856_v12 = vpop.eup %1855 }
 0x79b   : > { %v1110_v13 = vmul.f32 %v1856_v12, %v1854_v9 }
 0x79d   : > { %v1111_v17 = vpack.c.bf16 %v1110_v13, %v1110_v13 }
 0x79f   : > { %1749 = vmatmul.mubr.msk.bf16.vlgmr.msra.gmra.mrb[20].mxu0 %vm834_vm4, %v1111_v17  ;;  %v1583_v17 = vld [vmem:[%s2425_s10] ss:$0 sm:$0xff] }
 0x7a0   : > { %1753 = vmatpush3.bf16.xpose.msra.mxu0 %v1181_v5  ;;  %1760 = vmatprep.mubr.msk.bf16.mxu0 %vm1928_vm1, %v1927_v3 }
 0x7a1   : > { %1754 = vmatprep.subr.bf16.mxu0 %v1927_v3 }
 0x7a8   : > { %1755 = vmatpush3.bf16.xpose.msra.mxu0 %v1184_v57 }
 0x7a9   : > { %1756 = vmatprep.subr.bf16.mxu0 %v1927_v3 }
 0x7b0   : > { %1757 = vmatpush3.bf16.xpose.msra.mxu0 %v1187_v8 }
 0x7b1   : > { %1758 = vmatprep.subr.bf16.mxu0 %v1927_v3 }
 0x7b8   : > { %1759 = vmatpush3.bf16.xpose.msra.mxu0 %v1190_v20 }
 0x7bf   : > { %1761 = vmatmul.mubr.msk.bf16.vlgmr.msra.gmra.mrb[24].mxu0 %vm776_vm2, %v1168_v6 }
 0x872   : > { %v1161_v22 = vpop.f32.mrb[20].mxu0 }
 0x873   : > { %v1750_v15 = vpop.f32.mrb[21].mxu0 }
 0x874   : > { %v1164_v19 = vpop.f32.mrb[22].mxu0 }
 0x875   : > { %v1751_v23 = vpop.f32.mrb[23].mxu0 }
 0x892   : > { %v1226_v24 = vpop.f32.mrb[24].mxu0 }
 0x893   : > { %v1232_v25 = vmul.f32 0.35355338, %v1226_v24  ;;  %v1762_v26 = vpop.f32.mrb[25].mxu0 }
 0x894   : > { %v1229_v27 = vpop.f32.mrb[26].mxu0 }
 0x895   : > { %v1763_v28 = vpop.f32.mrb[27].mxu0  ;;  %v1233_v29 = vadd.f32 %v1232_v25, %v2202_v14 }
 0x897   : > { %v1234_v31 = vsel %vm834_vm4, %v1233_v29, -inf }
 0x898   : > { %1235 = vmax.xlane.f32.xlu1 %v1234_v31 }
 0x8a9   : > { %1248 = vrot.lane.b32.xlu1 %v2208_v37, %s1933_s15 }
 0x8ad   : > { %1250 = vrot.lane.b32.xlu1 %v2218_v48, %s1933_s15 }
 0x8b1   : > { %1302 = vrot.lane.b32.xlu1 %v2290_v46, %s1934_s16  ;;  %s1422_s16 = scalar_lea.sflag [#allocation3], %s431_s12 }
 0x925   : > { %v1236_v32 = vpop.xlane.xlu1 %1235 }
 0x926   : > { %v1237_v33 = vsub.f32 %v1233_v29, %v1236_v32 }
 0x928   : > { %v1238_v34 = vmul.f32 1.442695, %v1237_v33 }
 0x929   : > { %v1249_v35 = vpop.permute.xlu1 %1248 }
 0x92a   : > { %1857 = vpow2.f32 %v1238_v34  ;;  %1767 = vmatpush3.bf16.msra.mxu1 %v1249_v35 }
 0x92b   : > { %1768 = vmatprep.subr.bf16.mxu1 %v1927_v3 }
 0x92d   : > { %v1251_v14 = vpop.permute.xlu1 %1250 }
 0x92e   : > { %1769 = vmatpush3.bf16.msra.mxu1 %v1251_v14 }
 0x92f   : > { %1770 = vmatprep.subr.bf16.mxu1 %v1927_v3 }
 0x931   : > { %v1303_v52 = vpop.permute.xlu1 %1302 }
 0x934   : > { %v1858_v36 = vpop.eup %1857 }
 0x935   : > { %v1240_v37 = vsel %vm834_vm4, %v1858_v36, 0.0 }
 0x936   : > { %1241 = vadd.xlane.f32.xlu0 %v1240_v37 }
 0x94c   : > { %1252 = vrot.lane.b32.xlu0 %v2215_v47, %s1933_s15  ;;  %v1843_v47 = vld [vmem:[%s2422_s7] sm:$0xff]   ;;  %s1546_s15 = sshll.u32 %s431_s12, 3 }
 0x94d   : > { %v1344_v43 = vsel %vm514_vm0, %v1843_v47, 0  ;;  %s433_s14 = scalar_lea.vmem [#allocation2], %s1546_s15  ;;  %s1867_s15 = sshll.u32 %s1937_s21, 4  ;;  %s1868_s15 = int_to_ptr.vmem [resolvable:$false] %s1867_s15 }
 0x94e   : > { %s1869_s24 = scalar_lea.vmem %s1868_s15, 256 }
 0x950   : > { %1306 = vrot.lane.b32.xlu0 %v1161_v22, %s1935_s22 }
 0x9c3   : > { %v1242_v48 = vpop.xlane.xlu0 %1241 }
 0x9c4   : > { %1859 = vrcp.f32 %v1242_v48 }
 0x9c7   : > { %v1253_v39 = vpop.permute.xlu0 %1252 }
 0x9c8   : > { %1771 = vmatpush3.bf16.msra.mxu1 %v1253_v39 }
 0x9c9   : > { %1776 = vmatprep.subr.bf16.mxu1 %v1927_v3 }
 0x9cb   : > { %v1307_v53 = vpop.permute.xlu0 %1306 }
 0x9ce   : > { %v1860_v40 = vpop.eup %1859 }
 0x9cf   : > { %v1244_v41 = vmul.f32 %v1860_v40, %v1858_v36 }
 0x9d1   : > { %v1245_v42 = vpack.c.bf16 %v1244_v41, %v1244_v41 }
 0x9d3   : > { %1773 = vmatmul.mubr.msk.bf16.vlgmr.msra.gmra.mrb[20].mxu1 %vm834_vm4, %v1245_v42 }
 0x9d4   : > { %1780 = vmatprep.mubr.msk.bf16.mxu1 %vm1928_vm1, %v1927_v3  ;;  %1777 = vmatpush3.bf16.xpose.msra.mxu1 %v1344_v43 }
 0x9d5   : > { %1778 = vmatprep.subr.bf16.mxu1 %v1927_v3  ;;  %v1313_v3 = vsel %vm776_vm2, %v2245_v7, %v1303_v52 }
 0x9d6   : > { %v1315_v54 = vsel %vm1314_vm5, %v1313_v3, %v1307_v53 }
 0x9dc   : > { %1779 = vmatpush3.bf16.xpose.msra.mxu1 %v1347_v45 }
 0xaa6   : > { %v1295_v46 = vpop.f32.mrb[20].mxu1 }
 0xaa7   : > { %1310 = vrot.lane.b32.xlu1 %v1295_v46, %s1936_s25  ;;  %v1774_v49 = vpop.f32.mrb[21].mxu1  ;;  %s1435_s25 = sshll.u32 %s433_s14, 4  ;;  %s2374_s25 = int_to_ptr.vmem [resolvable:$true] %s1435_s25 }
 0xaa8   : > { %v1298_v50 = vpop.f32.mrb[22].mxu1  ;;  %s1863_s22 = scalar_lea.vmem %s2374_s25, 128  ;;  %p1870_p0 = scmp.lt.s32.totalorder %s2374_s25, %s1868_s15 }
 0xaa9   : > { %v1775_v51 = vpop.f32.mrb[23].mxu1  ;;  %p1864_p11 = scmp.ne.s32.totalorder %s2374_s25, %s1863_s22  ;;  %p1871_p1 = scmp.lt.s32.totalorder %s1869_s24, %s1863_s22 }
 0xaab   : > { %p1865_p12 = pnand %p1864_p11, %p2036_p5  ;;  %p1872_p2 = por %p1871_p1, %p1870_p0 }
 0xaad   : > { %p1866_p13 = pneg %p1865_p12 }
 0xaaf   : > { %p1873_p3 = pnand %p1872_p2, %p1866_p13 }
 0xb19   : > { %v1311_v55 = vpop.permute.xlu1 %1310 }
 0xb1a   : > { %v1317_v56 = vsel %vm1316_vm6, %v1315_v54, %v1311_v55 }
 0xb1b   : > { %v1318_v58 = vpack.c.bf16 %v1317_v56, %v1317_v56 }
 0xb1d   : > { %1781 = vmatmul.mubr.msk.bf16.vlgmr.msra.gmra.mrb[24].mxu1 %vm514_vm0, %v1318_v58 }
 0xbf0   : > { %v1383_v61 = vpop.f32.mrb[24].mxu1 }
 0xbf1   : > { %v1384_v62 = vadd.f32 %v1578_v60, %v1383_v61  ;;  %v1782_v63 = vpop.f32.mrb[25].mxu1 }
 0xbf2   : > { %v1386_v0 = vpop.f32.mrb[26].mxu1 }
 0xbf3   : > { %v1783_v1 = vpop.f32.mrb[27].mxu1  ;;  %v1389_v2 = vadd.f32 %v1384_v62, %v2122_v30  ;;  %v1582_v30 = vld [vmem:[%s2424_s9] ss:$0 sm:$0xff] }
 0xbf5   : > { %v1390_v7 = vsel %vm514_vm0, %v1389_v2, 0.0 }
 0xbf6   : > { %1391 = vadd.xlane.f32.xlu0 %v1390_v7 }
 0xc83   : > { %v1392_v59 = vpop.xlane.xlu0 %1391 }
 0xc84   : > { %v1394_v9 = vmul.f32 0.03125, %v1392_v59 }
 0xc86   : > { %v1395_v16 = vsub.f32 %v1389_v2, %v1394_v9 }
 0xc88   : > { %v1396_v38 = vmul.f32 %v1395_v16, %v1395_v16 }
 0xc8a   : > { %v1397_v4 = vsel %vm514_vm0, %v1396_v38, 0.0 }
 0xc8b   : > { %1398 = vadd.xlane.f32.xlu1 %v1397_v4 }
 0xd18   : > { %v1399_v6 = vpop.xlane.xlu1 %1398 }
 0xd19   : > { %v1400_v10 = vmul.f32 0.03125, %v1399_v6 }
 0xd1b   : > { %v1401_v11 = vadd.f32 1e-05, %v1400_v10 }
 0xd1d   : > { %1861 = vrsqrt.f32 %v1401_v11 }
 0xd27   : > { %v1862_v12 = vpop.eup %1861 }
 0xd28   : > { %v1403_v13 = vmul.f32 %v1862_v12, %v1395_v16 }
 0xd2a   : > { %v1411_v5 = vmul.f32 %v1582_v30, %v1403_v13 }
 0xd2c   : > { %v1419_v18 = vadd.f32 %v1583_v17, %v1411_v5 }
 0xd2e   : > { %1420 = vst.msk [vmem:[%s433_s14] sm:$0xff] %vm514_vm0, %v1419_v18 }
 0xd2f   : > { %1876 = shalt.err (!%p1873_p3)
}
 0xd30   : > { %s1877_s12 = scalar_lea.hbm %s2372_s0, 128  ;;  %s1881_s14 = scalar_lea.hbm %s2426_s11, 256 }
 0xd31   : > { %p1878_p4 = scmp.ne.s32.totalorder %s2372_s0, %s1877_s12  ;;  %p1882_p9 = scmp.lt.u32.totalorder %s2372_s0, %s2426_s11 }
 0xd32   : > { %p1883_p10 = scmp.lt.u32.totalorder %s1881_s14, %s1877_s12  ;;  %p1885_p12 = scmp.lt.u32.totalorder %s1877_s12, %s2372_s0 }
 0xd33   : > { %p1879_p7 = pnand %p1878_p4, %p2036_p5 }
 0xd34   : > { %p1884_p11 = por %p1883_p10, %p1882_p9 }
 0xd35   : > { %p1880_p8 = pneg %p1879_p7 }
 0xd36   : > { %p1886_p13 = por %p1885_p12, %p1884_p11 }
 0xd38   : > { %p1887_p0 = pnand %p1886_p13, %p1880_p8 }
 0xd3a   : > { %1890 = shalt.err (!%p1887_p0)
}
 0xd3b   : > { %1788 = dma.vmem_to_hbm [thread:$0]  (%p2036_p5), %s2374_s25, 128, %s2372_s0, %s1422_s16  }
 0xd3c PF: > { %p1794_p1 = scmp.ge.s32.totalorder %s1925_s20, 2  ;;  %s1447_s22 = sand.u32 1, %s1913_s17  }
 0xd3d   : > { %s1448_s21 = scalar_lea.sflag [#allocation3], %s1447_s22 }
 0xd3e   : > { %p1791_p2 = pnand %p1794_p1, %p2040_p6 }
 0xd40   : > { %1908 = dma.done.wait (!%p1791_p2), %s1448_s21, 128  }
 0xd41   : > { %1910 = vsyncadd (!%p1791_p2), %s1448_s21, 4294967168  ;;  %p21_p3 = scmp.ge.s32.totalorder %s2023_s23, 4   ;;  %s2433_s17 = smov %s1917_s18 }
 0xd42   : > { %s2434_s18 = smov %s1921_s19  ;;  %s2435_s19 = smov %s2034_s26 }
 0xd43   : > { %s2436_s20 = smov %s2023_s23  ;;  %23 = sbr.rel (!%p21_p3) target bundleno = 6 (0x6), region = 111 }
 0xd4a   :  { %1453 = vsyncpa [#allocation3], 1 }
 0xd4b   :  { %1455 = vsyncpa [#allocation3 + $0x1], 1 }

</bundles_post_ra>
